<compile_context>
chip_gen: v7x
topology: tpu7x:2x2x1
jax: 0.10.0
libtpu: 0.0.40
codegen_flags: <defaults>
</compile_context>

<pallas_src>
import jax
import jax.numpy as jnp
from jax.experimental import pallas as pl
from jax.experimental.pallas import tpu as pltpu


def actor_kernel(x_ref, w1_ref, b1_ref, wd_ref, bd_ref, o_ref):
    x = x_ref[...]                      # (TB, S) f32
    w1 = w1_ref[...]                    # (S, H)

    # ---- hidden layer as broadcast-FMAs (S is tiny, e.g. 4) + ReLU --------
    h = b1_ref[...]                     # (1, H); broadcasts on first add
    for k in range(x.shape[1]):         # static unrolled loop, S iterations
        h = h + x[:, k : k + 1] * w1[k : k + 1, :]
    h = jnp.maximum(h, 0.0)             # (TB, H)

    # ---- layer 2 + 2-way softmax as a logit-difference sigmoid ------------
    # d = (W2[:,0]-W2[:,1]) . h + (b2[0]-b2[1])   -> probs = [sig(d), sig(-d)]
    d = jnp.sum(h * wd_ref[...], axis=-1, keepdims=True) + bd_ref[...]  # (TB,1)

    lane = jax.lax.broadcasted_iota(jnp.int32, (1, 2), 1).astype(jnp.float32)
    sign = 1.0 - 2.0 * lane             # [[+1., -1.]]
    z = d * sign                        # (TB, 2)
    o_ref[...] = 1.0 / (1.0 + jnp.exp(-z))


def _round_up(n, m):
    return ((n + m - 1) // m) * m


def actor_forward(state, w1, b1, w2, b2, *, block_b=2048):
    """state: (B, state_dim) f32 -> probs (B, 2) f32 (softmax over actions)."""
    B, state_dim = state.shape
    hidden = w1.shape[1]
    assert w2.shape[1] == 2, "logit-difference path assumes action_dim == 2"

    # Precompute the 2-way-softmax-as-sigmoid parameters in the wrapper.
    w_diff = (w2[:, 0] - w2[:, 1]).reshape(1, hidden).astype(jnp.float32)
    b_diff = (b2[:, 0] - b2[:, 1]).reshape(1, 1).astype(jnp.float32)

    # Batch tile: multiple of 8 sublanes, capped so tiles fit comfortably in
    # VMEM on all of v5e/v6e/v7x (f32 hidden for TB=2048 is ~1 MiB).
    tb = min(block_b, _round_up(B, 8))
    padded_b = _round_up(B, tb)
    x = state.astype(jnp.float32)
    if padded_b != B:
        x = jnp.pad(x, ((0, padded_b - B), (0, 0)))

    out = pl.pallas_call(
        actor_kernel,
        out_shape=jax.ShapeDtypeStruct((padded_b, 2), jnp.float32),
        grid=(padded_b // tb,),
        in_specs=[
            pl.BlockSpec((tb, state_dim), lambda i: (i, 0)),      # state: streamed
            pl.BlockSpec((state_dim, hidden), lambda i: (0, 0)),  # w1: resident
            pl.BlockSpec((1, hidden), lambda i: (0, 0)),          # b1: resident
            pl.BlockSpec((1, hidden), lambda i: (0, 0)),          # w_diff: resident
            pl.BlockSpec((1, 1), lambda i: (0, 0)),               # b_diff: resident
        ],
        out_specs=pl.BlockSpec((tb, 2), lambda i: (i, 0)),
        compiler_params=pltpu.CompilerParams(
            dimension_semantics=("parallel",),
        ),
    )(x, w1.astype(jnp.float32), b1.astype(jnp.float32), w_diff, b_diff)
    return out[:B]


def init_params(key, state_dim, hidden, action_dim):
    """Deterministic init mimicking PyTorch's default U(-1/sqrt(fan_in), 1/sqrt(fan_in))."""
    k1, k2, k3, k4 = jax.random.split(key, 4)
    lim1 = 1.0 / jnp.sqrt(jnp.float32(state_dim))
    lim2 = 1.0 / jnp.sqrt(jnp.float32(hidden))
    # Stored pre-transposed: (in, out). Biases kept 2D (1, out) for TPU layout.
    w1 = jax.random.uniform(k1, (state_dim, hidden), jnp.float32, -lim1, lim1)
    b1 = jax.random.uniform(k2, (1, hidden), jnp.float32, -lim1, lim1)
    w2 = jax.random.uniform(k3, (hidden, action_dim), jnp.float32, -lim2, lim2)
    b2 = jax.random.uniform(k4, (1, action_dim), jnp.float32, -lim2, lim2)
    return w1, b1, w2, b2


def _reference(state, w1, b1, w2, b2):
    h = jnp.maximum(state @ w1 + b1, 0.0)
    return jax.nn.softmax(h @ w2 + b2, axis=-1)


if __name__ == "__main__":
    state_dim = 4
    action_dim = 2
    hidden = 128

    key = jax.random.PRNGKey(0)
    kx, kp, kx2 = jax.random.split(key, 3)
    w1, b1, w2, b2 = init_params(kp, state_dim, hidden, action_dim)

    # --- tiny batch (matches the PyTorch usage) ----------------------------
    batch = 2
    state = jax.random.normal(kx, (batch, state_dim), jnp.float32)
    probs = jax.block_until_ready(actor_forward(state, w1, b1, w2, b2))
    probs_ref = _reference(state, w1, b1, w2, b2)
    assert probs.shape == (batch, action_dim)
    assert jnp.allclose(probs, probs_ref, atol=1e-5, rtol=1e-5)
    assert jnp.allclose(jnp.sum(probs, axis=-1), 1.0, atol=1e-5)

    # --- larger ragged batch: exercises the grid, padding and slicing ------
    batch2 = 600
    state2 = jax.random.normal(kx2, (batch2, state_dim), jnp.float32)
    probs2 = jax.block_until_ready(
        actor_forward(state2, w1, b1, w2, b2, block_b=256)
    )
    probs2_ref = _reference(state2, w1, b1, w2, b2)
    assert probs2.shape == (batch2, action_dim)
    assert jnp.allclose(probs2, probs2_ref, atol=1e-5, rtol=1e-5)
    assert jnp.allclose(jnp.sum(probs2, axis=-1), 1.0, atol=1e-5)

    print("KERNEL_OK")
</pallas_src>

<mosaic_0001>
module attributes {stable_mosaic.version = 11 : i64} {
  func.func @actor_kernel(%arg0: i32, %arg1: memref<8x4xf32, #tpu.memory_space<vmem>>, %arg2: memref<4x128xf32, #tpu.memory_space<vmem>>, %arg3: memref<1x128xf32, #tpu.memory_space<vmem>>, %arg4: memref<1x128xf32, #tpu.memory_space<vmem>>, %arg5: memref<1x1xf32, #tpu.memory_space<vmem>>, %arg6: memref<8x2xf32, #tpu.memory_space<vmem>>) attributes {dimension_semantics = [#tpu.dimension_semantics<parallel>], iteration_bounds = array<i64: 1>, scalar_prefetch = 0 : i64, scratch_operands = 0 : i64, tpu.core_type = #tpu.core_type<tc>, window_params = [{transform_indices = @transform_0, window_bounds = array<i64: 8, 4>}, {pipeline_mode = #tpu.pipeline_mode<synchronous>, transform_indices = @transform_1, window_bounds = array<i64: 4, 128>}, {pipeline_mode = #tpu.pipeline_mode<synchronous>, transform_indices = @transform_2, window_bounds = array<i64: 1, 128>}, {pipeline_mode = #tpu.pipeline_mode<synchronous>, transform_indices = @transform_3, window_bounds = array<i64: 1, 128>}, {pipeline_mode = #tpu.pipeline_mode<synchronous>, transform_indices = @transform_4, window_bounds = array<i64: 1, 1>}, {transform_indices = @transform_5, window_bounds = array<i64: 8, 2>}]} {
    %c0 = arith.constant 0 : index
    %c0_0 = arith.constant 0 : index
    %0 = vector.load %arg1[%c0, %c0_0] : memref<8x4xf32, #tpu.memory_space<vmem>>, vector<8x4xf32>
    %c0_1 = arith.constant 0 : index
    %c0_2 = arith.constant 0 : index
    %1 = vector.load %arg2[%c0_1, %c0_2] : memref<4x128xf32, #tpu.memory_space<vmem>>, vector<4x128xf32>
    %c0_3 = arith.constant 0 : index
    %c0_4 = arith.constant 0 : index
    %2 = vector.load %arg3[%c0_3, %c0_4] : memref<1x128xf32, #tpu.memory_space<vmem>>, vector<1x128xf32>
    %3 = vector.extract_strided_slice %0 {offsets = [0, 0], sizes = [8, 1], strides = [1, 1]} : vector<8x4xf32> to vector<8x1xf32>
    %4 = vector.extract_strided_slice %1 {offsets = [0, 0], sizes = [1, 128], strides = [1, 1]} : vector<4x128xf32> to vector<1x128xf32>
    %5 = vector.broadcast %3 : vector<8x1xf32> to vector<8x128xf32>
    %6 = vector.broadcast %4 : vector<1x128xf32> to vector<8x128xf32>
    %7 = arith.mulf %5, %6 : vector<8x128xf32>
    %8 = vector.broadcast %2 : vector<1x128xf32> to vector<8x128xf32>
    %9 = arith.addf %8, %7 : vector<8x128xf32>
    %10 = vector.extract_strided_slice %0 {offsets = [0, 1], sizes = [8, 1], strides = [1, 1]} : vector<8x4xf32> to vector<8x1xf32>
    %11 = vector.extract_strided_slice %1 {offsets = [1, 0], sizes = [1, 128], strides = [1, 1]} : vector<4x128xf32> to vector<1x128xf32>
    %12 = vector.broadcast %10 : vector<8x1xf32> to vector<8x128xf32>
    %13 = vector.broadcast %11 : vector<1x128xf32> to vector<8x128xf32>
    %14 = arith.mulf %12, %13 : vector<8x128xf32>
    %15 = arith.addf %9, %14 : vector<8x128xf32>
    %16 = vector.extract_strided_slice %0 {offsets = [0, 2], sizes = [8, 1], strides = [1, 1]} : vector<8x4xf32> to vector<8x1xf32>
    %17 = vector.extract_strided_slice %1 {offsets = [2, 0], sizes = [1, 128], strides = [1, 1]} : vector<4x128xf32> to vector<1x128xf32>
    %18 = vector.broadcast %16 : vector<8x1xf32> to vector<8x128xf32>
    %19 = vector.broadcast %17 : vector<1x128xf32> to vector<8x128xf32>
    %20 = arith.mulf %18, %19 : vector<8x128xf32>
    %21 = arith.addf %15, %20 : vector<8x128xf32>
    %22 = vector.extract_strided_slice %0 {offsets = [0, 3], sizes = [8, 1], strides = [1, 1]} : vector<8x4xf32> to vector<8x1xf32>
    %23 = vector.extract_strided_slice %1 {offsets = [3, 0], sizes = [1, 128], strides = [1, 1]} : vector<4x128xf32> to vector<1x128xf32>
    %24 = vector.broadcast %22 : vector<8x1xf32> to vector<8x128xf32>
    %25 = vector.broadcast %23 : vector<1x128xf32> to vector<8x128xf32>
    %26 = arith.mulf %24, %25 : vector<8x128xf32>
    %27 = arith.addf %21, %26 : vector<8x128xf32>
    %cst = arith.constant 0.000000e+00 : f32
    %28 = vector.broadcast %cst : f32 to vector<8x128xf32>
    %29 = arith.maximumf %27, %28 : vector<8x128xf32>
    %c0_5 = arith.constant 0 : index
    %c0_6 = arith.constant 0 : index
    %30 = vector.load %arg4[%c0_5, %c0_6] : memref<1x128xf32, #tpu.memory_space<vmem>>, vector<1x128xf32>
    %31 = vector.broadcast %30 : vector<1x128xf32> to vector<8x128xf32>
    %32 = arith.mulf %29, %31 : vector<8x128xf32>
    %cst_7 = arith.constant dense<0.000000e+00> : vector<8xf32>
    %33 = vector.multi_reduction <add>, %32, %cst_7 [1] : vector<8x128xf32> to vector<8xf32>
    %34 = vector.shape_cast %33 : vector<8xf32> to vector<8x1xf32>
    %c0_8 = arith.constant 0 : index
    %c0_9 = arith.constant 0 : index
    %35 = vector.load %arg5[%c0_8, %c0_9] : memref<1x1xf32, #tpu.memory_space<vmem>>, vector<1x1xf32>
    %36 = vector.broadcast %35 : vector<1x1xf32> to vector<8x1xf32>
    %37 = arith.addf %34, %36 : vector<8x1xf32>
    %38 = tpu.iota {dimensions = array<i32: 1>} : vector<1x2xi32>
    %39 = arith.sitofp %38 : vector<1x2xi32> to vector<1x2xf32>
    %cst_10 = arith.constant 2.000000e+00 : f32
    %40 = vector.broadcast %cst_10 : f32 to vector<1x2xf32>
    %41 = arith.mulf %40, %39 : vector<1x2xf32>
    %cst_11 = arith.constant 1.000000e+00 : f32
    %42 = vector.broadcast %cst_11 : f32 to vector<1x2xf32>
    %43 = arith.subf %42, %41 : vector<1x2xf32>
    %44 = vector.broadcast %37 : vector<8x1xf32> to vector<8x2xf32>
    %45 = vector.broadcast %43 : vector<1x2xf32> to vector<8x2xf32>
    %46 = arith.mulf %44, %45 : vector<8x2xf32>
    %cst_12 = arith.constant 0.000000e+00 : f32
    %47 = vector.broadcast %cst_12 : f32 to vector<8x2xf32>
    %48 = arith.subf %47, %46 : vector<8x2xf32>
    %49 = math.exp %48 : vector<8x2xf32>
    %cst_13 = arith.constant 1.000000e+00 : f32
    %50 = vector.broadcast %cst_13 : f32 to vector<8x2xf32>
    %51 = arith.addf %50, %49 : vector<8x2xf32>
    %cst_14 = arith.constant 1.000000e+00 : f32
    %52 = vector.broadcast %cst_14 : f32 to vector<8x2xf32>
    %53 = arith.divf %52, %51 : vector<8x2xf32>
    %c0_15 = arith.constant 0 : index
    %c0_16 = arith.constant 0 : index
    %54 = vector.load %arg6[%c0_15, %c0_16] : memref<8x2xf32, #tpu.memory_space<vmem>>, vector<8x2xf32>
    tpu.vector_store %arg6[%c0_15, %c0_16], %53 {strides = array<i32>} : memref<8x2xf32, #tpu.memory_space<vmem>>, vector<8x2xf32>,
    return
  }
  func.func @transform_0(%arg0: i32) -> (i32, i32) {
    %c0_i32 = arith.constant 0 : i32
    %c0_i32_0 = arith.constant 0 : i32
    return %arg0, %c0_i32 : i32, i32
  }
  func.func @transform_1(%arg0: i32) -> (i32, i32) {
    %c0_i32 = arith.constant 0 : i32
    %c0_i32_0 = arith.constant 0 : i32
    %c0_i32_1 = arith.constant 0 : i32
    return %c0_i32, %c0_i32_0 : i32, i32
  }
  func.func @transform_2(%arg0: i32) -> (i32, i32) {
    %c0_i32 = arith.constant 0 : i32
    %c0_i32_0 = arith.constant 0 : i32
    %c0_i32_1 = arith.constant 0 : i32
    return %c0_i32, %c0_i32_0 : i32, i32
  }
  func.func @transform_3(%arg0: i32) -> (i32, i32) {
    %c0_i32 = arith.constant 0 : i32
    %c0_i32_0 = arith.constant 0 : i32
    %c0_i32_1 = arith.constant 0 : i32
    return %c0_i32, %c0_i32_0 : i32, i32
  }
  func.func @transform_4(%arg0: i32) -> (i32, i32) {
    %c0_i32 = arith.constant 0 : i32
    %c0_i32_0 = arith.constant 0 : i32
    %c0_i32_1 = arith.constant 0 : i32
    return %c0_i32, %c0_i32_0 : i32, i32
  }
  func.func @transform_5(%arg0: i32) -> (i32, i32) {
    %c0_i32 = arith.constant 0 : i32
    %c0_i32_0 = arith.constant 0 : i32
    return %arg0, %c0_i32 : i32, i32
  }
}

</mosaic_0001>

<bundles_post_ra>
// kernel: tpu_custom_call.1
= control target key start
LH: loop header
LB: loop body
LE: loop exit
PB: predicated region body
PF: predicated region fallthrough
CT: control target
= control target key end

     0   :  { %v130_v0 = vmov 0   ;;  %v131_v2 = vmov 2   ;;  %v132_v3 = vmov 1   ;;  %v133_v4 = vmov 3   ;;  %s182_s0 = inlined_call_operand.vmem [shape: f32[8,4], index: 0, kind: input, shape index: {}]   ;;  %s183_s4 = inlined_call_operand.<no memory space> [shape: f32[1,1], index: 4, kind: input, shape index: {}]   ;;  %s184_s1 = inlined_call_operand.vmem [shape: f32[4,128], index: 1, kind: input, shape index: {}]   ;;  %s185_s2 = inlined_call_operand.vmem [shape: f32[1,128], index: 2, kind: input, shape index: {}]   ;;  %s186_s3 = inlined_call_operand.vmem [shape: f32[1,128], index: 3, kind: input, shape index: {}]   ;;  %s187_s5 = inlined_call_operand.vmem [shape: f32[8,2], index: 5, kind: output, shape index: {}]  }
   0x1   :  { %121 = vset.pattern.permute.xlu0 %v130_v0  ;;  %v22_v1 = vld [vmem:[%s182_s0] sm:$0xff]  ;;  %123 = vset.pattern.permute.xlu1 %v131_v2  ;;  %v10_v5 = vstv %s183_s4  ;;  %v30_v6 = vlaneseq  ;;  %vm108_vm0 = vcmask 15360  }
   0x2   :  { %27 = vperm.xlu0 %121, %v22_v1   ;;  %53 = vperm.xlu1 %123, %v22_v1   ;;  %11 = vst [vmem:[#allocation2] sm:$0x1] %v10_v5  ;;  %v23_v9 = vld [vmem:[%s184_s1] sm:$0xf] }
   0x3   :  { %v31_v7 = vshrl.u32 %v30_v6, 7  ;;  %v114_v18 = vld [vmem:[%s185_s2] ss:$0 sm:$0xff]  ;;  %v92_v36 = vand.u32 127, %v30_v6 }
   0x4   :  { %v115_v30 = vld [vmem:[%s186_s3] ss:$0 sm:$0xff] }
   0x5   :  { %v32_v8 = vsub.s32 0, %v31_v7  ;;  %v48_v11 = vsub.s32 1, %v31_v7  ;;  %v58_v13 = vsub.s32 2, %v31_v7  ;;  %v68_v15 = vsub.s32 3, %v31_v7 }
   0x6   :  { %122 = vset.pattern.permute.xlu0 %v132_v3  ;;  %124 = vset.pattern.permute.xlu1 %v133_v4  ;;  %v93_v37 = vcvt.s32.f32 %v92_v36 }
   0x7   :  { %43 = vperm.xlu0 %122, %v22_v1   ;;  %63 = vperm.xlu1 %124, %v22_v1   ;;  %v33_v10 = vrot.slane %v23_v9, %v32_v8  ;;  %v49_v17 = vrot.slane %v23_v9, %v48_v11  ;;  %v59_v19 = vrot.slane %v23_v9, %v58_v13 }
   0x8   :  { %v69_v20 = vrot.slane %v23_v9, %v68_v15  ;;  %v94_v38 = vmul.f32 2.0, %v93_v37 }
   0x9   :  { %v116_v33 = vld [vmem:[#allocation2] ss:$0 sm:$0xff] }
   0xa   :  { %v95_v39 = vsub.f32 1.0, %v94_v38 }
   0xb   :  { %125 = vset.pattern.permute.xlu0 %v130_v0 }
  0x81   :  { %v28_v12 = vpop.permute.xlu0 %27  ;;  %v54_v14 = vpop.permute.xlu1 %53 }
  0x82   :  { %v34_v16 = vmul.f32 %v33_v10, %v28_v12  ;;  %v60_v25 = vmul.f32 %v59_v19, %v54_v14 }
  0x84   :  { %v41_v23 = vadd.f32 %v114_v18, %v34_v16 }
  0x86   :  { %v44_v21 = vpop.permute.xlu0 %43  ;;  %v64_v22 = vpop.permute.xlu1 %63 }
  0x87   :  { %v50_v24 = vmul.f32 %v49_v17, %v44_v21  ;;  %v70_v27 = vmul.f32 %v69_v20, %v64_v22 }
  0x89   :  { %v51_v26 = vadd.f32 %v50_v24, %v41_v23 }
  0x8b   :  { %v61_v28 = vadd.f32 %v60_v25, %v51_v26 }
  0x8d   :  { %v71_v29 = vadd.f32 %v70_v27, %v61_v28 }
  0x8f   :  { %v72_v31 = vmax.f32 %v71_v29, 0.0 }
  0x91   :  { %v80_v32 = vmul.f32 %v115_v30, %v72_v31 }
  0x93   :  { %81 = vadd.xlane.f32.xlu1 %v80_v32 }
 0x120   :  { %v82_v34 = vpop.xlane.xlu1 %81 }
 0x121   :  { %v90_v35 = vadd.f32 %v116_v33, %v82_v34 }
 0x123   :  { %98 = vperm.xlu0 %125, %v90_v35  }
 0x1a2   :  { %v99_v40 = vpop.permute.xlu0 %98 }
 0x1a3   :  { %v101_v41 = vmul.f32 %v99_v40, %v95_v39 }
 0x1a5   :  { %v102_v42 = vsub.f32 0.0, %v101_v41 }
 0x1a7   :  { %v103_v43 = vmul.f32 1.442695, %v102_v42 }
 0x1a9   :  { %126 = vpow2.f32 %v103_v43 }
 0x1b3   :  { %v127_v44 = vpop.eup %126 }
 0x1b4   :  { %v105_v45 = vadd.f32 1.0, %v127_v44 }
 0x1b6   :  { %128 = vrcp.f32 %v105_v45 }
 0x1c0   :  { %v129_v46 = vpop.eup %128 }
 0x1c1   :  { %109 = vst.msk [vmem:[%s187_s5] sm:$0xff] %vm108_vm0, %v129_v46 }

</bundles_post_ra>
